<compile_context>
chip_gen: v7x
topology: tpu7x:2x2x1
jax: 0.10.0
libtpu: 0.0.40
codegen_flags: <defaults>
</compile_context>

<pallas_src>
from functools import partial

import jax
import jax.numpy as jnp
from jax.experimental import pallas as pl
from jax.experimental.pallas import tpu as pltpu

EPS = 1e-5


def _round_up(x, m):
    return (x + m - 1) // m * m


# ---------------------------------------------------------------------------
# Kernel: [one-hot @ folded emb tables + x_cont @ W1c] -> ReLU -> Linear ->
#         ReLU -> Linear -> y_range(sigmoid).  All BN folded, dropout identity.
# ---------------------------------------------------------------------------
def tabular_mlp_kernel(xcat_ref, xcont_ref, t_ref, w1c_ref, b1_ref,
                       w2_ref, b2_ref, w3_ref, b3_ref, out_ref,
                       *, cat_offsets, y_lo, y_hi):
    tm = xcat_ref.shape[0]
    total_ni = t_ref.shape[0]

    # --- Layer 0: fused embedding lookup + Linear (+ folded bn_cont) + ReLU --
    # E_i[idx] @ W1_emb_i == onehot(idx) @ (E_i @ W1_emb_i); the folded tables
    # are stacked row-wise in t_ref, so one combined one-hot + one MXU matmul.
    xcat = xcat_ref[...]                                     # (tm, n_cat) i32
    iota = jax.lax.broadcasted_iota(jnp.int32, (tm, total_ni), 1)
    oh = jnp.zeros((tm, total_ni), jnp.float32)
    for j, off in enumerate(cat_offsets):
        oh = oh + (xcat[:, j:j + 1] + off == iota).astype(jnp.float32)

    h = jnp.dot(oh, t_ref[...], preferred_element_type=jnp.float32)
    h = h + jnp.dot(xcont_ref[...].astype(jnp.float32), w1c_ref[...],
                    preferred_element_type=jnp.float32)
    h = jnp.maximum(h + b1_ref[...], 0.0)

    # --- Layer 1: [BN1 folded, Dropout=identity] -> Linear -> ReLU ----------
    h = jnp.dot(h, w2_ref[...], preferred_element_type=jnp.float32)
    h = jnp.maximum(h + b2_ref[...], 0.0)

    # --- Layer 2: [BN2 folded, Dropout=identity] -> Linear -> y_range -------
    o = jnp.dot(h, w3_ref[...], preferred_element_type=jnp.float32) + b3_ref[...]
    out_ref[...] = (y_hi - y_lo) * jax.nn.sigmoid(o) + y_lo


# ---------------------------------------------------------------------------
# Parameter folding: eval-mode BN is affine -> compose with adjacent Linear;
# embedding tables are folded through the first Linear.
# ---------------------------------------------------------------------------
def fold_params(params):
    def bn_affine(g, b, m, v):
        s = g * jax.lax.rsqrt(v + EPS)      # eval-mode BN:  y = x * s + t
        return s, b - m * s

    # Embedding tables folded through the first Linear (emb_drop = identity):
    #   E_i[idx] @ W1_emb_i  ==  onehot(idx) @ (E_i @ W1_emb_i)
    w1e = params["w1e"]
    tabs, offs, row, off = [], [], 0, 0
    for E in params["emb_weights"]:
        ni, nf = E.shape
        tabs.append(E @ w1e[row:row + nf, :])
        offs.append(off)
        row += nf
        off += ni
    t_all = jnp.concatenate(tabs, axis=0)                  # (sum ni, h1)

    # bn_cont folded into the continuous half of W1 and into b1
    s_c, t_c = bn_affine(params["bnc_g"], params["bnc_b"],
                         params["bnc_m"], params["bnc_v"])
    w1c = params["w1c"] * s_c.reshape(-1, 1)
    b1 = params["b1"] + t_c.reshape(1, -1) @ params["w1c"]

    # bn1 -> W2/b2, bn2 -> W3/b3 (true output width -- NO lane padding)
    s1, t1 = bn_affine(params["bn1_g"], params["bn1_b"],
                       params["bn1_m"], params["bn1_v"])
    w2 = params["w2"] * s1.reshape(-1, 1)
    b2 = params["b2"] + t1.reshape(1, -1) @ params["w2"]

    s2, t2 = bn_affine(params["bn2_g"], params["bn2_b"],
                       params["bn2_m"], params["bn2_v"])
    w3 = params["w3"] * s2.reshape(-1, 1)
    b3 = params["b3"] + t2.reshape(1, -1) @ params["w3"]

    return (t_all, w1c, b1, w2, b2, w3, b3), tuple(offs)


# ---------------------------------------------------------------------------
# Wrapper: single batch-tiled pallas_call; no HBM activation materialization.
# ---------------------------------------------------------------------------
def tabular_forward(x_cat, x_cont, params, y_range, *, block_rows=4096):
    """block_rows: max batch-tile rows per grid step.  4096 is sized for v7x's
    32 MiB scoped VMEM; on v5e/v6e pass 8192+ (and a larger vmem_limit)."""
    B = x_cat.shape[0]
    (t_all, w1c, b1, w2, b2, w3, b3), cat_offsets = fold_params(params)
    n_cat = x_cat.shape[1]
    n_cont = w1c.shape[0]
    out_sz = w3.shape[1]

    # Batch tiling: biggest tile that fits, but (a) a multiple of 16 (bf16
    # sublane packing for x_cont) and (b) >= 2 grid steps when the batch
    # allows it so the "parallel" axis shards over v7x's 2 TensorCores.
    GRAN = 16
    b_ceil = _round_up(max(B, 1), GRAN)
    tm = max(GRAN, min(_round_up(block_rows, GRAN),
                       _round_up(pl.cdiv(b_ceil, 2), GRAN)))
    b_pad = _round_up(B, tm)

    x_cat = x_cat.astype(jnp.int32)
    x_cont = x_cont.astype(jnp.bfloat16)   # halve streamed-activation reads
    if b_pad != B:                         # pad only the tiny raw inputs
        x_cat = jnp.pad(x_cat, ((0, b_pad - B), (0, 0)))
        x_cont = jnp.pad(x_cont, ((0, b_pad - B), (0, 0)))

    # Weights / biases / folded embedding tables: untiled, VMEM-resident for
    # the whole call (fetched once; no per-step double-buffering needed).
    resident = pl.BlockSpec(memory_space=pltpu.MemorySpace.VMEM)
    stream = lambda cols: pl.BlockSpec((tm, cols), lambda i: (i, 0))

    # TODO(synk): y_range must be concrete Python scalars here; pass them as
    # SMEM scalars instead if they ever need to be traced / jitted over.
    kernel = partial(tabular_mlp_kernel, cat_offsets=cat_offsets,
                     y_lo=float(y_range[0]), y_hi=float(y_range[1]))

    out = pl.pallas_call(
        kernel,
        out_shape=jax.ShapeDtypeStruct((b_pad, out_sz), jnp.float32),
        grid=(b_pad // tm,),
        in_specs=[
            stream(n_cat),      # x_cat  (int32) streamed
            stream(n_cont),     # x_cont (bf16)  streamed
            resident,           # t_all = stacked E_i @ W1_emb_i
            resident,           # W1_cont (bn_cont folded)
            resident,           # b1
            resident,           # W2 (bn1 folded)
            resident,           # b2
            resident,           # W3 (bn2 folded, true out_sz width)
            resident,           # b3
        ],
        out_specs=pl.BlockSpec((tm, out_sz), lambda i: (i, 0)),
        compiler_params=pltpu.CompilerParams(
            dimension_semantics=("parallel",),
            vmem_limit_bytes=32 * 1024 * 1024,
        ),
    )(x_cat, x_cont, t_all, w1c, b1, w2, b2, w3, b3)

    return out if b_pad == B else out[:B]


# ---------------------------------------------------------------------------
# Synthetic parameters mirroring the PyTorch module's shapes / init.
# ---------------------------------------------------------------------------
def make_params(key, emb_szs, n_cont, layers, out_sz):
    ks = jax.random.split(key, 16)
    n_emb = sum(nf for _, nf in emb_szs)
    h1, h2 = layers

    def lin(k, n_in, n_out, scale):
        kw, kb = jax.random.split(k)
        w = jax.random.uniform(kw, (n_in, n_out), jnp.float32, -scale, scale)
        b = jax.random.uniform(kb, (1, n_out), jnp.float32, -scale, scale)
        return w, b

    emb_weights = [
        0.01 * jax.random.normal(ks[i], (ni, nf), jnp.float32)
        for i, (ni, nf) in enumerate(emb_szs)
    ]

    # Non-trivial BN affine + running stats so the fold is actually exercised.
    def bn(k, n):
        k1, k2, k3, k4 = jax.random.split(k, 4)
        g = 1.0 + 0.1 * jax.random.normal(k1, (1, n), jnp.float32)
        b = 0.1 * jax.random.normal(k2, (1, n), jnp.float32)
        m = 0.1 * jax.random.normal(k3, (1, n), jnp.float32)
        v = 1.0 + 0.1 * jax.random.uniform(k4, (1, n), jnp.float32)
        return g, b, m, v

    bnc_g, bnc_b, bnc_m, bnc_v = bn(ks[11], n_cont)
    bn1_g, bn1_b, bn1_m, bn1_v = bn(ks[12], h1)
    bn2_g, bn2_b, bn2_m, bn2_v = bn(ks[13], h2)

    w1, b1 = lin(ks[8], n_emb + n_cont, h1, 1.0 / (n_emb + n_cont) ** 0.5)
    w2, b2 = lin(ks[9], h1, h2, 1.0 / h1 ** 0.5)
    w3, b3 = lin(ks[10], h2, out_sz, 1.0 / h2 ** 0.5)

    return dict(
        emb_weights=emb_weights,
        bnc_g=bnc_g, bnc_b=bnc_b, bnc_m=bnc_m, bnc_v=bnc_v,
        w1e=w1[:n_emb, :], w1c=w1[n_emb:, :], b1=b1,
        bn1_g=bn1_g, bn1_b=bn1_b, bn1_m=bn1_m, bn1_v=bn1_v,
        w2=w2, b2=b2,
        bn2_g=bn2_g, bn2_b=bn2_b, bn2_m=bn2_m, bn2_v=bn2_v,
        w3=w3, b3=b3,
    )


# ---------------------------------------------------------------------------
# Pure-JAX references.
# ---------------------------------------------------------------------------
def reference_forward(x_cat, x_cont, params, y_range):
    """Mirrors the PyTorch forward exactly (eval mode, unfolded BN)."""
    embs = [params["emb_weights"][i][x_cat[:, i]]
            for i in range(len(params["emb_weights"]))]
    x_emb = jnp.concatenate(embs, axis=1)
    xc = (x_cont - params["bnc_m"]) / jnp.sqrt(params["bnc_v"] + EPS)
    xc = xc * params["bnc_g"] + params["bnc_b"]
    x = jnp.concatenate([x_emb, xc], axis=1)
    w1 = jnp.concatenate([params["w1e"], params["w1c"]], axis=0)
    h = jnp.maximum(x @ w1 + params["b1"], 0.0)
    h = (h - params["bn1_m"]) / jnp.sqrt(params["bn1_v"] + EPS) * params["bn1_g"] + params["bn1_b"]
    h = jnp.maximum(h @ params["w2"] + params["b2"], 0.0)
    h = (h - params["bn2_m"]) / jnp.sqrt(params["bn2_v"] + EPS) * params["bn2_g"] + params["bn2_b"]
    o = h @ params["w3"] + params["b3"]
    return (y_range[1] - y_range[0]) * jax.nn.sigmoid(o) + y_range[0]


def folded_forward_jax(x_cat, x_cont, params, y_range):
    """Same math as the kernel (BN + embedding folding), in plain f32 JAX."""
    (t_all, w1c, b1, w2, b2, w3, b3), offs = fold_params(params)
    h = x_cont.astype(jnp.float32) @ w1c + b1
    for j, off in enumerate(offs):
        h = h + t_all[x_cat[:, j] + off]
    h = jnp.maximum(h, 0.0)
    h = jnp.maximum(h @ w2 + b2, 0.0)
    o = h @ w3 + b3
    return (y_range[1] - y_range[0]) * jax.nn.sigmoid(o) + y_range[0]


if __name__ == "__main__":
    # Small config: 2 categorical vars, 4 continuous, hidden [32, 16], 2 outputs.
    emb_szs = [(10, 3), (7, 5)]      # -> n_emb = 8
    n_cont = 4
    layers = [32, 16]
    out_sz = 2
    y_range = (0.0, 5.0)
    B = 8

    key = jax.random.PRNGKey(0)
    kp, kc1, kc2, kx = jax.random.split(key, 4)

    params = make_params(kp, emb_szs, n_cont, layers, out_sz)

    x_cat = jnp.stack(
        [
            jax.random.randint(kc1, (B,), 0, emb_szs[0][0], dtype=jnp.int32),
            jax.random.randint(kc2, (B,), 0, emb_szs[1][0], dtype=jnp.int32),
        ],
        axis=1,
    )  # [B, 2] int32
    x_cont = jax.random.normal(kx, (B, n_cont), jnp.float32)  # [B, 4]

    out = tabular_forward(x_cat, x_cont, params, y_range)
    out = jax.block_until_ready(out)

    ref = reference_forward(x_cat, x_cont, params, y_range)
    folded = folded_forward_jax(x_cat, x_cont, params, y_range)

    assert out.shape == (B, out_sz)
    # BN / embedding folding algebra is exact up to f32 rounding:
    assert jnp.allclose(folded, ref, atol=1e-5, rtol=1e-5), (folded, ref)
    # Kernel vs module reference (x_cont streamed as bf16 -> looser tolerance):
    assert jnp.allclose(out, ref, atol=3e-2, rtol=3e-2), (out, ref)

    print("KERNEL_OK")
</pallas_src>

<mosaic_0001>
module attributes {stable_mosaic.version = 11 : i64} {
  func.func @tabular_mlp_kernel(%arg0: i32, %arg1: memref<16x2xi32, #tpu.memory_space<vmem>>, %arg2: memref<16x4xbf16, #tpu.memory_space<vmem>>, %arg3: memref<17x32xf32, #tpu.memory_space<vmem>>, %arg4: memref<4x32xf32, #tpu.memory_space<vmem>>, %arg5: memref<1x32xf32, #tpu.memory_space<vmem>>, %arg6: memref<32x16xf32, #tpu.memory_space<vmem>>, %arg7: memref<1x16xf32, #tpu.memory_space<vmem>>, %arg8: memref<16x2xf32, #tpu.memory_space<vmem>>, %arg9: memref<1x2xf32, #tpu.memory_space<vmem>>, %arg10: memref<16x2xf32, #tpu.memory_space<vmem>>) attributes {dimension_semantics = [#tpu.dimension_semantics<parallel>], iteration_bounds = array<i64: 1>, scalar_prefetch = 0 : i64, scratch_operands = 0 : i64, tpu.core_type = #tpu.core_type<tc>, window_params = [{transform_indices = @transform_0, window_bounds = array<i64: 16, 2>}, {transform_indices = @transform_1, window_bounds = array<i64: 16, 4>}, {pipeline_mode = #tpu.pipeline_mode<synchronous>, transform_indices = @transform_2, window_bounds = array<i64: 17, 32>}, {pipeline_mode = #tpu.pipeline_mode<synchronous>, transform_indices = @transform_3, window_bounds = array<i64: 4, 32>}, {pipeline_mode = #tpu.pipeline_mode<synchronous>, transform_indices = @transform_4, window_bounds = array<i64: 1, 32>}, {pipeline_mode = #tpu.pipeline_mode<synchronous>, transform_indices = @transform_5, window_bounds = array<i64: 32, 16>}, {pipeline_mode = #tpu.pipeline_mode<synchronous>, transform_indices = @transform_6, window_bounds = array<i64: 1, 16>}, {pipeline_mode = #tpu.pipeline_mode<synchronous>, transform_indices = @transform_7, window_bounds = array<i64: 16, 2>}, {pipeline_mode = #tpu.pipeline_mode<synchronous>, transform_indices = @transform_8, window_bounds = array<i64: 1, 2>}, {transform_indices = @transform_9, window_bounds = array<i64: 16, 2>}]} {
    %c0 = arith.constant 0 : index
    %c0_0 = arith.constant 0 : index
    %0 = vector.load %arg1[%c0, %c0_0] : memref<16x2xi32, #tpu.memory_space<vmem>>, vector<16x2xi32>
    %1 = tpu.iota {dimensions = array<i32: 1>} : vector<16x17xi32>
    %cst = arith.constant 0.000000e+00 : f32
    %2 = vector.broadcast %cst : f32 to vector<16x17xf32>
    %3 = vector.extract_strided_slice %0 {offsets = [0, 0], sizes = [16, 1], strides = [1, 1]} : vector<16x2xi32> to vector<16x1xi32>
    %c0_i32 = arith.constant 0 : i32
    %4 = vector.broadcast %c0_i32 : i32 to vector<16x1xi32>
    %5 = arith.addi %3, %4 : vector<16x1xi32>
    %6 = vector.broadcast %5 : vector<16x1xi32> to vector<16x17xi32>
    %7 = arith.cmpi eq, %6, %1 : vector<16x17xi32>
    %8 = arith.extui %7 : vector<16x17xi1> to vector<16x17xi32>
    %9 = arith.sitofp %8 : vector<16x17xi32> to vector<16x17xf32>
    %10 = arith.addf %2, %9 : vector<16x17xf32>
    %11 = vector.extract_strided_slice %0 {offsets = [0, 1], sizes = [16, 1], strides = [1, 1]} : vector<16x2xi32> to vector<16x1xi32>
    %c10_i32 = arith.constant 10 : i32
    %12 = vector.broadcast %c10_i32 : i32 to vector<16x1xi32>
    %13 = arith.addi %11, %12 : vector<16x1xi32>
    %14 = vector.broadcast %13 : vector<16x1xi32> to vector<16x17xi32>
    %15 = arith.cmpi eq, %14, %1 : vector<16x17xi32>
    %16 = arith.extui %15 : vector<16x17xi1> to vector<16x17xi32>
    %17 = arith.sitofp %16 : vector<16x17xi32> to vector<16x17xf32>
    %18 = arith.addf %10, %17 : vector<16x17xf32>
    %c0_1 = arith.constant 0 : index
    %c0_2 = arith.constant 0 : index
    %19 = vector.load %arg3[%c0_1, %c0_2] : memref<17x32xf32, #tpu.memory_space<vmem>>, vector<17x32xf32>
    %cst_3 = arith.constant dense<0.000000e+00> : vector<16x32xf32>
    %20 = tpu.matmul %18, %19, %cst_3 {dimension_numbers = #tpu.dot_dimension_numbers<[1], [0], [0], [1], [0, 0, 1, 1], [], []>} : vector<16x17xf32>, vector<17x32xf32>, vector<16x32xf32> -> vector<16x32xf32>
    %c0_4 = arith.constant 0 : index
    %c0_5 = arith.constant 0 : index
    %21 = vector.load %arg2[%c0_4, %c0_5] : memref<16x4xbf16, #tpu.memory_space<vmem>>, vector<16x4xbf16>
    %22 = arith.extf %21 : vector<16x4xbf16> to vector<16x4xf32>
    %c0_6 = arith.constant 0 : index
    %c0_7 = arith.constant 0 : index
    %23 = vector.load %arg4[%c0_6, %c0_7] : memref<4x32xf32, #tpu.memory_space<vmem>>, vector<4x32xf32>
    %cst_8 = arith.constant dense<0.000000e+00> : vector<16x32xf32>
    %24 = tpu.matmul %22, %23, %cst_8 {dimension_numbers = #tpu.dot_dimension_numbers<[1], [0], [0], [1], [0, 0, 1, 1], [], []>} : vector<16x4xf32>, vector<4x32xf32>, vector<16x32xf32> -> vector<16x32xf32>
    %25 = arith.addf %20, %24 : vector<16x32xf32>
    %c0_9 = arith.constant 0 : index
    %c0_10 = arith.constant 0 : index
    %26 = vector.load %arg5[%c0_9, %c0_10] : memref<1x32xf32, #tpu.memory_space<vmem>>, vector<1x32xf32>
    %27 = vector.broadcast %26 : vector<1x32xf32> to vector<16x32xf32>
    %28 = arith.addf %25, %27 : vector<16x32xf32>
    %cst_11 = arith.constant 0.000000e+00 : f32
    %29 = vector.broadcast %cst_11 : f32 to vector<16x32xf32>
    %30 = arith.maximumf %28, %29 : vector<16x32xf32>
    %c0_12 = arith.constant 0 : index
    %c0_13 = arith.constant 0 : index
    %31 = vector.load %arg6[%c0_12, %c0_13] : memref<32x16xf32, #tpu.memory_space<vmem>>, vector<32x16xf32>
    %cst_14 = arith.constant dense<0.000000e+00> : vector<16x16xf32>
    %32 = tpu.matmul %30, %31, %cst_14 {dimension_numbers = #tpu.dot_dimension_numbers<[1], [0], [0], [1], [0, 0, 1, 1], [], []>} : vector<16x32xf32>, vector<32x16xf32>, vector<16x16xf32> -> vector<16x16xf32>
    %c0_15 = arith.constant 0 : index
    %c0_16 = arith.constant 0 : index
    %33 = vector.load %arg7[%c0_15, %c0_16] : memref<1x16xf32, #tpu.memory_space<vmem>>, vector<1x16xf32>
    %34 = vector.broadcast %33 : vector<1x16xf32> to vector<16x16xf32>
    %35 = arith.addf %32, %34 : vector<16x16xf32>
    %cst_17 = arith.constant 0.000000e+00 : f32
    %36 = vector.broadcast %cst_17 : f32 to vector<16x16xf32>
    %37 = arith.maximumf %35, %36 : vector<16x16xf32>
    %c0_18 = arith.constant 0 : index
    %c0_19 = arith.constant 0 : index
    %38 = vector.load %arg8[%c0_18, %c0_19] : memref<16x2xf32, #tpu.memory_space<vmem>>, vector<16x2xf32>
    %cst_20 = arith.constant dense<0.000000e+00> : vector<16x2xf32>
    %39 = tpu.matmul %37, %38, %cst_20 {dimension_numbers = #tpu.dot_dimension_numbers<[1], [0], [0], [1], [0, 0, 1, 1], [], []>} : vector<16x16xf32>, vector<16x2xf32>, vector<16x2xf32> -> vector<16x2xf32>
    %c0_21 = arith.constant 0 : index
    %c0_22 = arith.constant 0 : index
    %40 = vector.load %arg9[%c0_21, %c0_22] : memref<1x2xf32, #tpu.memory_space<vmem>>, vector<1x2xf32>
    %41 = vector.broadcast %40 : vector<1x2xf32> to vector<16x2xf32>
    %42 = arith.addf %39, %41 : vector<16x2xf32>
    %43 = arith.negf %42 : vector<16x2xf32>
    %44 = math.exp %43 : vector<16x2xf32>
    %cst_23 = arith.constant 1.000000e+00 : f32
    %45 = vector.broadcast %cst_23 : f32 to vector<16x2xf32>
    %46 = arith.addf %45, %44 : vector<16x2xf32>
    %47 = arith.divf %45, %46 : vector<16x2xf32>
    %cst_24 = arith.constant 5.000000e+00 : f32
    %48 = vector.broadcast %cst_24 : f32 to vector<16x2xf32>
    %49 = arith.mulf %48, %47 : vector<16x2xf32>
    %cst_25 = arith.constant 0.000000e+00 : f32
    %50 = vector.broadcast %cst_25 : f32 to vector<16x2xf32>
    %51 = arith.addf %49, %50 : vector<16x2xf32>
    %c0_26 = arith.constant 0 : index
    %c0_27 = arith.constant 0 : index
    %52 = vector.load %arg10[%c0_26, %c0_27] : memref<16x2xf32, #tpu.memory_space<vmem>>, vector<16x2xf32>
    tpu.vector_store %arg10[%c0_26, %c0_27], %51 {strides = array<i32>} : memref<16x2xf32, #tpu.memory_space<vmem>>, vector<16x2xf32>,
    return
  }
  func.func @transform_0(%arg0: i32) -> (i32, i32) {
    %c0_i32 = arith.constant 0 : i32
    %c0_i32_0 = arith.constant 0 : i32
    return %arg0, %c0_i32 : i32, i32
  }
  func.func @transform_1(%arg0: i32) -> (i32, i32) {
    %c0_i32 = arith.constant 0 : i32
    %c0_i32_0 = arith.constant 0 : i32
    return %arg0, %c0_i32 : i32, i32
  }
  func.func @transform_2(%arg0: i32) -> (i32, i32) {
    %c0_i32 = arith.constant 0 : i32
    %c0_i32_0 = arith.constant 0 : i32
    %c0_i32_1 = arith.constant 0 : i32
    return %c0_i32, %c0_i32_0 : i32, i32
  }
  func.func @transform_3(%arg0: i32) -> (i32, i32) {
    %c0_i32 = arith.constant 0 : i32
    %c0_i32_0 = arith.constant 0 : i32
    %c0_i32_1 = arith.constant 0 : i32
    return %c0_i32, %c0_i32_0 : i32, i32
  }
  func.func @transform_4(%arg0: i32) -> (i32, i32) {
    %c0_i32 = arith.constant 0 : i32
    %c0_i32_0 = arith.constant 0 : i32
    %c0_i32_1 = arith.constant 0 : i32
    return %c0_i32, %c0_i32_0 : i32, i32
  }
  func.func @transform_5(%arg0: i32) -> (i32, i32) {
    %c0_i32 = arith.constant 0 : i32
    %c0_i32_0 = arith.constant 0 : i32
    %c0_i32_1 = arith.constant 0 : i32
    return %c0_i32, %c0_i32_0 : i32, i32
  }
  func.func @transform_6(%arg0: i32) -> (i32, i32) {
    %c0_i32 = arith.constant 0 : i32
    %c0_i32_0 = arith.constant 0 : i32
    %c0_i32_1 = arith.constant 0 : i32
    return %c0_i32, %c0_i32_0 : i32, i32
  }
  func.func @transform_7(%arg0: i32) -> (i32, i32) {
    %c0_i32 = arith.constant 0 : i32
    %c0_i32_0 = arith.constant 0 : i32
    %c0_i32_1 = arith.constant 0 : i32
    return %c0_i32, %c0_i32_0 : i32, i32
  }
  func.func @transform_8(%arg0: i32) -> (i32, i32) {
    %c0_i32 = arith.constant 0 : i32
    %c0_i32_0 = arith.constant 0 : i32
    %c0_i32_1 = arith.constant 0 : i32
    return %c0_i32, %c0_i32_0 : i32, i32
  }
  func.func @transform_9(%arg0: i32) -> (i32, i32) {
    %c0_i32 = arith.constant 0 : i32
    %c0_i32_0 = arith.constant 0 : i32
    return %arg0, %c0_i32 : i32, i32
  }
}

</mosaic_0001>

<bundles_post_ra>
// kernel: tpu_custom_call.1
= control target key start
LH: loop header
LB: loop body
LE: loop exit
PB: predicated region body
PF: predicated region fallthrough
CT: control target
= control target key end

     0   :  { %v572_v0 = vmov 0   ;;  %v573_v8 = vmov 1   ;;  %vm81_vm0 = vcmask 1043456   ;;  %vm74_vm1 = vcmask 31744   ;;  %s679_s0 = inlined_call_operand.vmem [shape: s32[16,2], index: 0, kind: input, shape index: {}]   ;;  %s680_s2 = inlined_call_operand.vmem [shape: f32[17,32], index: 2, kind: input, shape index: {}]   ;;  %s681_s1 = inlined_call_operand.vmem [shape: bf16[16,4], index: 1, kind: input, shape index: {}]   ;;  %s682_s3 = inlined_call_operand.vmem [shape: f32[4,32], index: 3, kind: input, shape index: {}]   ;;  %s683_s5 = inlined_call_operand.vmem [shape: f32[32,16], index: 5, kind: input, shape index: {}]   ;;  %s684_s4 = inlined_call_operand.vmem [shape: f32[1,32], index: 4, kind: input, shape index: {}]   ;;  %s685_s7 = inlined_call_operand.vmem [shape: f32[16,2], index: 7, kind: input, shape index: {}]   ;;  %s686_s6 = inlined_call_operand.vmem [shape: f32[1,16], index: 6, kind: input, shape index: {}]   ;;  %s687_s8 = inlined_call_operand.vmem [shape: f32[1,2], index: 8, kind: input, shape index: {}]   ;;  %s688_s9 = inlined_call_operand.vmem [shape: f32[16,2], index: 9, kind: output, shape index: {}]  }
   0x1   :  { %562 = vset.pattern.permute.xlu1 %v572_v0  ;;  %560 = vset.pattern.permute.xlu0 %v572_v0  ;;  %v33_v1 = vld [vmem:[%s679_s0 + $0x8] sm:$0xff]  ;;  %v32_v2 = vld [vmem:[%s679_s0] sm:$0xff]  ;;  %v68_v13 = vld [vmem:[%s680_s2 + $0x10] sm:$0x1]  ;;  %vm167_vm2 = vcmask 1040384   ;;  %v34_v14 = vlaneseq  ;;  %vm160_vm7 = vcmask 138240  }
   0x2   :  { %40 = vperm.xlu1 %562, %v33_v1   ;;  %37 = vperm.xlu0 %560, %v32_v2   ;;  %v51_v3 = vadd.s32 10, %v33_v1  ;;  %v50_v4 = vadd.s32 10, %v32_v2  ;;  %v66_v5 = vld [vmem:[%s680_s2] sm:$0xff]  ;;  %v67_v6 = vld [vmem:[%s680_s2 + $0x8] sm:$0xff]  ;;  %v574_v20 = vmov 0.0   ;;  %v259_v32 = vld [vmem:[%s683_s5 + $0x10] sm:$0xff] }
   0x3   :  { %v539_v7 = vpack.c.bf16 %v67_v6, %v66_v5  ;;  %v486_v9 = vld [vmem:[%s681_s1] sm:$0xff]   ;;  %v35_v15 = vand.u32 127, %v34_v14  ;;  %v258_v28 = vld [vmem:[%s683_s5 + $0x8] sm:$0xff]  ;;  %v260_v33 = vld [vmem:[%s683_s5 + $0x18] sm:$0xff]  ;;  %vm268_vm8 = vcmask 261120   ;;  %vm361_vm9 = vcmask 130048  }
   0x4   :  { %v73_v10 = vld [vmem:[%s682_s3] sm:$0xf]  ;;  %v487_v11 = vunpack.c.l.bf16 %v486_v9  ;;  %v488_v12 = vunpack.c.h.bf16 %v486_v9  ;;  %v547_v34 = vpack.c.bf16 %v260_v33, %v259_v32  ;;  %v353_v45 = vld [vmem:[%s685_s7 + $0x8] sm:$0xff]  ;;  %vm459_vm10 = vcmask 15360  }
   0x5   :  { %540 = vmatprep.subr.bf16.mxu0 %v539_v7  ;;  %507 = vmatprep.subr.msk.mxu1 %vm81_vm0, %v73_v10  ;;  %v257_v27 = vld [vmem:[%s683_s5] sm:$0xff] }
   0x6   :  { %563 = vset.pattern.permute.xlu1 %v573_v8  ;;  %561 = vset.pattern.permute.xlu0 %v573_v8  ;;  %v543_v30 = vpack.c.bf16 %v258_v28, %v257_v27  ;;  %v476_v36 = vld [vmem:[%s684_s4] ss:$0 sm:$0xff] }
   0x7   :  { %56 = vperm.xlu1 %563, %v51_v3   ;;  %53 = vperm.xlu0 %561, %v50_v4   ;;  %v352_v44 = vld [vmem:[%s685_s7] sm:$0xff] }
   0x8   :  { %542 = vmatpush3.bf16.msra.mxu0 %v539_v7  ;;  %508 = vmatpush3.msk.msra.mxu1 %vm81_vm0, %v73_v10  ;;  %v551_v46 = vpack.c.bf16 %v353_v45, %v352_v44  ;;  %v477_v47 = vld [vmem:[%s686_s6] ss:$0 sm:$0xff] }
   0x9   :  { %509 = vmatprep.mubr.msk.f32.mxu1 %vm74_vm1, %v487_v11  ;;  %516 = vmatprep.subr.msk.mxu0 %vm167_vm2, %v68_v13  ;;  %v480_v54 = vld [vmem:[%s687_s8] ss:$0 sm:$0xff] }
   0xa   :  { %510 = vmatmul.mubr.msk.f32.vlgmr.msra.gmra.mrb[0].mxu1 %vm74_vm1, %v488_v12  ;;  %544 = vmatprep.subr.bf16.mxu1 %v543_v30 }
   0xb   :  { %546 = vmatpush3.bf16.msra.mxu1 %v543_v30 }
   0xc   :  { %517 = vmatpush3.msk.msra.mxu0 %vm167_vm2, %v68_v13  ;;  %548 = vmatprep.subr.bf16.mxu1 %v547_v34 }
   0xd   :  { %552 = vmatprep.subr.bf16.mxu0 %v551_v46 }
   0xf   :  { %550 = vmatpush3.bf16.msra.mxu1 %v547_v34 }
  0x81   :  { %v38_v16 = vpop.permute.xlu0 %37  ;;  %v41_v17 = vpop.permute.xlu1 %40 }
  0x82   :  { %vm42_vm3 = vcmp.eq.s32.totalorder %v38_v16, %v35_v15  ;;  %vm43_vm4 = vcmp.eq.s32.totalorder %v41_v17, %v35_v15 }
  0x83   :  { %v466_v21 = vsel %vm42_vm3, 1.0, %v574_v20  ;;  %v467_v22 = vsel %vm43_vm4, 1.0, %v574_v20 }
  0x86   :  { %v57_v18 = vpop.permute.xlu1 %56  ;;  %v54_v19 = vpop.permute.xlu0 %53 }
  0x87   :  { %vm59_vm5 = vcmp.eq.s32.totalorder %v57_v18, %v35_v15  ;;  %vm58_vm6 = vcmp.eq.s32.totalorder %v54_v19, %v35_v15 }
  0x88   :  { %v469_v23 = vsel %vm59_vm5, 1.0, %v574_v20  ;;  %v468_v24 = vsel %vm58_vm6, 1.0, %v574_v20 }
  0x89   :  { %v65_v25 = vadd.f32 %v469_v23, %v467_v22  ;;  %v64_v26 = vadd.f32 %v468_v24, %v466_v21 }
  0x8b   :  { %518 = vmatprep.mubr.msk.f32.mxu0 %vm160_vm7, %v64_v26 }
  0x8c   :  { %519 = vmatmul.mubr.msk.f32.vlgmr.msra.gmra.mrb[0].mxu0 %vm160_vm7, %v65_v25 }
  0x8d   :  { %554 = vmatpush3.bf16.msra.mxu0 %v551_v46 }
  0xdd   :  { %v511_v29 = vpop.f32.mrb[0].mxu1 }
  0xde   :  { %v151_v31 = vpop.f32.mrb[1].mxu1 }
 0x15f   :  { %v520_v35 = vpop.f32.mrb[0].mxu0 }
 0x160   :  { %v243_v37 = vadd.f32 %v520_v35, %v511_v29  ;;  %v237_v38 = vpop.f32.mrb[1].mxu0 }
 0x161   :  { %v238_v39 = vadd.f32 %v237_v38, %v151_v31 }
 0x162   :  { %v254_v40 = vadd.f32 %v476_v36, %v243_v37 }
 0x163   :  { %v253_v41 = vadd.f32 %v476_v36, %v238_v39 }
 0x164   :  { %v256_v43 = vmax.f32 %v254_v40, 0.0 }
 0x165   :  { %v255_v42 = vmax.f32 %v253_v41, 0.0 }
 0x167   :  { %529 = vmatprep.mubr.msk.f32.mxu1 %vm268_vm8, %v255_v42 }
 0x168   :  { %530 = vmatmul.mubr.msk.f32.vlgmr.msra.gmra.mrb[2].mxu1 %vm268_vm8, %v256_v43 }
 0x23b   :  { %v531_v48 = vpop.f32.mrb[2].mxu1 }
 0x23c   :  { %v347_v49 = vadd.f32 %v531_v48, %v477_v47  ;;  %v341_v50 = vpop.f32.mrb[3].mxu1 }
 0x23d   :  { %v342_v51 = vadd.f32 %v477_v47, %v341_v50 }
 0x23e   :  { %v351_v53 = vmax.f32 %v347_v49, 0.0 }
 0x23f   :  { %v350_v52 = vmax.f32 %v342_v51, 0.0 }
 0x241   :  { %536 = vmatprep.mubr.msk.f32.mxu0 %vm361_vm9, %v350_v52 }
 0x242   :  { %537 = vmatmul.mubr.msk.f32.vlgmr.msra.gmra.mrb[2].mxu0 %vm361_vm9, %v351_v53 }
 0x315   :  { %v538_v55 = vpop.f32.mrb[2].mxu0 }
 0x316   :  { %v440_v56 = vadd.f32 %v538_v55, %v480_v54  ;;  %v434_v57 = vpop.f32.mrb[3].mxu0 }
 0x317   :  { %v435_v58 = vadd.f32 %v480_v54, %v434_v57 }
 0x318   :  { %v484_v59 = vmul.f32 -1.442695, %v440_v56 }
 0x319   :  { %v483_v60 = vmul.f32 -1.442695, %v435_v58 }
 0x31a   :  { %564 = vpow2.f32 %v484_v59 }
 0x31b   :  { %566 = vpow2.f32 %v483_v60 }
 0x324   :  { %v565_v61 = vpop.eup %564 }
 0x325   :  { %v567_v62 = vpop.eup %566  ;;  %v450_v63 = vadd.f32 1.0, %v565_v61 }
 0x326   :  { %v449_v0 = vadd.f32 1.0, %v567_v62 }
 0x327   :  { %568 = vrcp.f32 %v450_v63 }
 0x328   :  { %570 = vrcp.f32 %v449_v0 }
 0x331   :  { %v569_v1 = vpop.eup %568 }
 0x332   :  { %v571_v2 = vpop.eup %570  ;;  %v456_v3 = vmul.f32 5.0, %v569_v1 }
 0x333   :  { %v455_v4 = vmul.f32 5.0, %v571_v2 }
 0x334   :  { %461 = vst.msk [vmem:[%s688_s9 + $0x8] sm:$0xff] %vm459_vm10, %v456_v3 }
 0x335   :  { %460 = vst.msk [vmem:[%s688_s9] sm:$0xff] %vm459_vm10, %v455_v4 }

</bundles_post_ra>
